<compile_context>
chip_gen: v6e
topology: v6e:2x2x1
jax: 0.10.0
libtpu: 0.0.40
codegen_flags: <defaults>
</compile_context>

<pallas_src>
import jax
import jax.numpy as jnp
from jax.experimental import pallas as pl
from jax.experimental.pallas import tpu as pltpu

_MB = 1024 * 1024


# ----------------------------------------------------------------------------
# Parameter init helper (deterministic stand-in for
# scaled_bell_distribution_capped_at_2_times_sigma: normal(center, sigma)
# clipped to center +/- 2*sigma).
# ----------------------------------------------------------------------------
def scaled_bell_distribution_capped_at_2_times_sigma(key, n, center, sigma):
    vals = center + sigma * jax.random.normal(key, (n,), dtype=jnp.float32)
    return jnp.clip(vals, center - 2.0 * sigma, center + 2.0 * sigma)


# ----------------------------------------------------------------------------
# Pallas kernel: fused linear + potential update + threshold gating.
# ----------------------------------------------------------------------------
def pglu_tresh_kernel(x_ref, w_ref, params_ref, pot_ref, act_ref, png_ref):
    # new_x = x @ W  (MXU matmul, f32 accumulation)
    new_x = jnp.dot(x_ref[...], w_ref[...], preferred_element_type=jnp.float32)

    params = params_ref[...].astype(jnp.float32)   # (3, tile_n)
    bias = params[0:1, :]
    tresh = params[1:2, :]
    decay = params[2:3, :]

    # potential += (x @ W + b)
    potential = pot_ref[...].astype(jnp.float32) + new_x + bias

    # Original: gated = relu(potential - tresh)
    #   gated != 0  <=> potential >  tresh  -> pass potential
    #   gated == 0  <=> potential <= tresh  -> pass potential * decay
    # TODO(synk): Bump/InvertedBump surrogate-gradient backward is not
    # translated; only forward semantics are implemented (would need custom_vjp).
    mask = potential > tresh
    act_ref[...] = jnp.where(mask, potential, 0.0).astype(act_ref.dtype)
    png_ref[...] = jnp.where(mask, 0.0, potential * decay).astype(png_ref.dtype)


# ----------------------------------------------------------------------------
# VMEM budget (per-generation) and tile planning.
# ----------------------------------------------------------------------------
def _vmem_budget_bytes():
    try:
        cap = int(pltpu.get_tpu_info().vmem_capacity_bytes)
    except Exception:
        cap = 64 * _MB  # conservative default (v7x per-TC VMEM)
    # Leave ~25% headroom for compiler-internal scratch / semaphores:
    # ~48 MiB on v7x (64 MiB parts), ~96 MiB on v5e/v6e (128 MiB parts).
    return (cap * 3) // 4


def _choose_tile(dim, target, quantum):
    """Largest multiple-of-`quantum` divisor of `dim` that is <= `target`.

    If no divisor exists, return the target itself (NOT the full dim) and let
    pl.cdiv + partial edge blocks handle the ragged remainder, so awkward
    sizes can never blow VMEM."""
    if dim <= target:
        return dim                         # full-extent block is always legal
    t = max((target // quantum) * quantum, quantum)
    best = t
    while t >= quantum:
        if dim % t == 0:
            return t
        t -= quantum
    return best


def _plan_tiles(B, In, Out, x_bytes, w_bytes, pot_bytes, out_bytes, vmem_budget):
    # dtype-aware sublane quantum for the batch axis (8 f32, 16 bf16, 32 int8).
    bq = max(8, 32 // max(1, min(x_bytes, out_bytes)))
    if vmem_budget >= 72 * _MB:            # 128 MiB VMEM parts (v5e / v6e)
        tb_target, tn_target = 1024, 512
    else:                                  # 64 MiB VMEM parts (v7x)
        tb_target, tn_target = 512, 512

    tile_b = _choose_tile(B, tb_target, bq)
    tile_n = _choose_tile(Out, tn_target, 128)

    def footprint(tb, tn):
        f = 2 * tb * In * x_bytes                  # x tile, double-buffered
        f += 2 * In * tn * w_bytes                 # W tile, double-buffered
        f += 2 * 8 * max(tn, 128) * 4              # packed params, padded sublanes
        f += 2 * tb * tn * pot_bytes               # potential tile
        f += 2 * 2 * tb * tn * out_bytes           # two output tiles
        return f

    limit = int(vmem_budget * 0.8)                 # keep pipeline 2-deep
    while footprint(tile_b, tile_n) > limit and (tile_b > bq or tile_n > 128):
        # shrink whichever operand tile dominates the footprint
        if tile_b * In * x_bytes >= In * tile_n * w_bytes and tile_b > bq:
            tile_b = max(bq, tile_b // 2)
        elif tile_n > 128:
            tile_n = max(128, tile_n // 2)
        else:
            tile_b = max(bq, tile_b // 2)
    return tile_b, tile_n


# ----------------------------------------------------------------------------
# Param packing (hoist out of the per-timestep path for recurrent use).
# ----------------------------------------------------------------------------
def pack_pglu_params(b, tresh, decay_rate):
    return jnp.stack([b.astype(jnp.float32),
                      tresh.astype(jnp.float32),
                      decay_rate.astype(jnp.float32)], axis=0)   # (3, Out)


# ----------------------------------------------------------------------------
# Wrapper
# ----------------------------------------------------------------------------
def pglu_tresh_forward(x, potential, W, b=None, tresh=None, decay_rate=None, *,
                       packed_params=None,
                       tile_b=None, tile_n=None,
                       matmul_dtype=None, out_dtype=None,
                       donate_potential=False):
    B, In = x.shape
    Out = W.shape[1]
    assert potential.shape == (B, Out)

    if out_dtype is None:
        # Keep the recurrent state output in the potential's dtype (f32 by
        # default); narrowing it accumulates rounding across timesteps.
        out_dtype = potential.dtype

    # Optionally narrow the MXU operands (elementwise math stays in f32).
    # For recurrent use, persist W in bf16 at layer-construction time instead
    # of re-casting every timestep.
    if matmul_dtype is not None:
        x_mm = x.astype(matmul_dtype)
        W_mm = W.astype(matmul_dtype)
    else:
        x_mm, W_mm = x, W

    if packed_params is None:
        packed_params = pack_pglu_params(b, tresh, decay_rate)
    assert packed_params.shape == (3, Out)

    x_bytes = jnp.dtype(x_mm.dtype).itemsize
    w_bytes = jnp.dtype(W_mm.dtype).itemsize
    pot_bytes = jnp.dtype(potential.dtype).itemsize
    out_bytes = jnp.dtype(out_dtype).itemsize

    vmem_limit = _vmem_budget_bytes()

    if tile_b is None or tile_n is None:
        pb, pn = _plan_tiles(B, In, Out, x_bytes, w_bytes, pot_bytes,
                             out_bytes, vmem_limit)
        tile_b = tile_b if tile_b is not None else pb
        tile_n = tile_n if tile_n is not None else pn

    grid_b = pl.cdiv(B, tile_b)
    grid_n = pl.cdiv(Out, tile_n)

    # Grid-axis ordering: the array indexed only by the OUTER axis is streamed
    # from HBM exactly once; the one indexed by the inner axis is re-streamed
    # per outer step.  Pick the cheaper option, and never put a 1-block axis
    # outermost when the other has >= 2 blocks (megacore occupancy on v7x).
    restream_out_major = (grid_n - 1) * B * In * x_bytes      # x re-fetched
    restream_batch_major = (grid_b - 1) * In * Out * w_bytes  # W re-fetched
    if grid_b == 1 and grid_n > 1:
        out_major = True
    elif grid_n == 1:
        out_major = False
    else:
        out_major = restream_out_major <= restream_batch_major

    if out_major:
        grid = (grid_n, grid_b)
        def b_of(i, j): return j
        def n_of(i, j): return i
    else:
        grid = (grid_b, grid_n)
        def b_of(i, j): return i
        def n_of(i, j): return j

    x_spec = pl.BlockSpec((tile_b, In), lambda i, j: (b_of(i, j), 0))
    w_spec = pl.BlockSpec((In, tile_n), lambda i, j: (0, n_of(i, j)))
    params_spec = pl.BlockSpec((3, tile_n), lambda i, j: (0, n_of(i, j)))
    pot_spec = pl.BlockSpec((tile_b, tile_n),
                            lambda i, j: (b_of(i, j), n_of(i, j)))
    out_spec = pl.BlockSpec((tile_b, tile_n),
                            lambda i, j: (b_of(i, j), n_of(i, j)))

    io_aliases = {}
    if donate_potential and potential.dtype == jnp.dtype(out_dtype):
        # Reuse the `potential` input buffer for potential_non_gated.  Under
        # jit the caller must ALSO donate the argument (donate_argnums).
        io_aliases = {3: 1}

    w_reads = 1 if out_major else grid_b
    x_reads = grid_n if out_major else 1
    cost = pl.CostEstimate(
        flops=2 * B * In * Out,
        transcendentals=0,
        bytes_accessed=(x_reads * B * In * x_bytes
                        + w_reads * In * Out * w_bytes
                        + B * Out * pot_bytes
                        + 3 * Out * 4
                        + 2 * B * Out * out_bytes),
    )

    activated, potential_non_gated = pl.pallas_call(
        pglu_tresh_kernel,
        out_shape=(
            jax.ShapeDtypeStruct((B, Out), out_dtype),
            jax.ShapeDtypeStruct((B, Out), out_dtype),
        ),
        grid_spec=pltpu.PrefetchScalarGridSpec(
            num_scalar_prefetch=0,
            grid=grid,
            in_specs=[
                x_spec,        # x
                w_spec,        # W (In, Out) tiled over Out
                params_spec,   # packed (bias, tresh, decay)
                pot_spec,      # potential
            ],
            out_specs=[out_spec, out_spec],
        ),
        compiler_params=pltpu.CompilerParams(
            dimension_semantics=("parallel", "parallel"),
            vmem_limit_bytes=vmem_limit),
        cost_estimate=cost,
        input_output_aliases=io_aliases,
    )(x_mm, W_mm, packed_params, potential)

    return activated, potential_non_gated


# ----------------------------------------------------------------------------
# Pure-JAX reference (mirrors the PyTorch forward)
# ----------------------------------------------------------------------------
def pglu_tresh_reference(x, potential, W, b, tresh, decay_rate):
    new_x = x @ W + b
    potential = potential + new_x
    treshed = potential - tresh
    gated = jnp.maximum(treshed, 0.0)
    gated_bool = (gated > 0.0).astype(jnp.float32)
    non_gated_bool = (gated == 0.0).astype(jnp.float32)
    activated = gated_bool * potential
    potential_non_gated = potential * non_gated_bool * decay_rate
    return activated, potential_non_gated


if __name__ == "__main__":
    # Small shapes implied by the module: (batch, input_size) -> (batch, output_size)
    B, input_size, output_size = 8, 32, 128
    init_tresh_center, init_tresh_sigma = 0.5, 0.1
    init_decay_center, init_decay_sigma = 0.9, 0.05

    key = jax.random.PRNGKey(0)
    k_x, k_pot, k_w, k_b, k_tresh, k_decay = jax.random.split(key, 6)

    x = jax.random.normal(k_x, (B, input_size), dtype=jnp.float32)
    potential = jax.random.normal(k_pot, (B, output_size), dtype=jnp.float32)

    # Deterministic parameter init (nn.Linear-like scale for W/b).
    W = jax.random.normal(k_w, (input_size, output_size), dtype=jnp.float32) \
        * (1.0 / jnp.sqrt(input_size))
    b = jax.random.normal(k_b, (output_size,), dtype=jnp.float32) \
        * (1.0 / jnp.sqrt(input_size))
    tresh = scaled_bell_distribution_capped_at_2_times_sigma(
        k_tresh, output_size, init_tresh_center, init_tresh_sigma)
    decay_rate = scaled_bell_distribution_capped_at_2_times_sigma(
        k_decay, output_size, init_decay_center, init_decay_sigma)

    # Pack params once (per-layer, not per-timestep) and run the kernel.
    packed = pack_pglu_params(b, tresh, decay_rate)
    activated, potential_non_gated = jax.block_until_ready(
        pglu_tresh_forward(x, potential, W, packed_params=packed))

    # Correctness check vs pure-JAX reference.
    ref_act, ref_png = pglu_tresh_reference(x, potential, W, b, tresh, decay_rate)
    assert jnp.allclose(activated, ref_act, atol=1e-5, rtol=1e-5)
    assert jnp.allclose(potential_non_gated, ref_png, atol=1e-5, rtol=1e-5)

    print("KERNEL_OK")
</pallas_src>

<mosaic_0001>
module attributes {stable_mosaic.version = 11 : i64} {
  func.func @pglu_tresh_kernel(%arg0: i32, %arg1: i32, %arg2: memref<8x32xf32, #tpu.memory_space<vmem>>, %arg3: memref<32x128xf32, #tpu.memory_space<vmem>>, %arg4: memref<3x128xf32, #tpu.memory_space<vmem>>, %arg5: memref<8x128xf32, #tpu.memory_space<vmem>>, %arg6: memref<8x128xf32, #tpu.memory_space<vmem>>, %arg7: memref<8x128xf32, #tpu.memory_space<vmem>>) attributes {dimension_semantics = [#tpu.dimension_semantics<parallel>, #tpu.dimension_semantics<parallel>], iteration_bounds = array<i64: 1, 1>, scalar_prefetch = 0 : i64, scratch_operands = 0 : i64, tpu.core_type = #tpu.core_type<tc>, window_params = [{transform_indices = @transform_0, window_bounds = array<i64: 8, 32>}, {transform_indices = @transform_1, window_bounds = array<i64: 32, 128>}, {transform_indices = @transform_2, window_bounds = array<i64: 3, 128>}, {transform_indices = @transform_3, window_bounds = array<i64: 8, 128>}, {transform_indices = @transform_4, window_bounds = array<i64: 8, 128>}, {transform_indices = @transform_5, window_bounds = array<i64: 8, 128>}]} {
    %c0 = arith.constant 0 : index
    %c0_0 = arith.constant 0 : index
    %0 = vector.load %arg2[%c0, %c0_0] : memref<8x32xf32, #tpu.memory_space<vmem>>, vector<8x32xf32>
    %c0_1 = arith.constant 0 : index
    %c0_2 = arith.constant 0 : index
    %1 = vector.load %arg3[%c0_1, %c0_2] : memref<32x128xf32, #tpu.memory_space<vmem>>, vector<32x128xf32>
    %cst = arith.constant dense<0.000000e+00> : vector<8x128xf32>
    %2 = tpu.matmul %0, %1, %cst {dimension_numbers = #tpu.dot_dimension_numbers<[1], [0], [0], [1], [0, 0, 1, 1], [], []>} : vector<8x32xf32>, vector<32x128xf32>, vector<8x128xf32> -> vector<8x128xf32>
    %c0_3 = arith.constant 0 : index
    %c0_4 = arith.constant 0 : index
    %3 = vector.load %arg4[%c0_3, %c0_4] : memref<3x128xf32, #tpu.memory_space<vmem>>, vector<3x128xf32>
    %4 = vector.extract_strided_slice %3 {offsets = [0, 0], sizes = [1, 128], strides = [1, 1]} : vector<3x128xf32> to vector<1x128xf32>
    %5 = vector.extract_strided_slice %3 {offsets = [1, 0], sizes = [1, 128], strides = [1, 1]} : vector<3x128xf32> to vector<1x128xf32>
    %6 = vector.extract_strided_slice %3 {offsets = [2, 0], sizes = [1, 128], strides = [1, 1]} : vector<3x128xf32> to vector<1x128xf32>
    %c0_5 = arith.constant 0 : index
    %c0_6 = arith.constant 0 : index
    %7 = vector.load %arg5[%c0_5, %c0_6] : memref<8x128xf32, #tpu.memory_space<vmem>>, vector<8x128xf32>
    %8 = arith.addf %7, %2 : vector<8x128xf32>
    %9 = vector.broadcast %4 : vector<1x128xf32> to vector<8x128xf32>
    %10 = arith.addf %8, %9 : vector<8x128xf32>
    %11 = vector.broadcast %5 : vector<1x128xf32> to vector<8x128xf32>
    %12 = arith.cmpf ogt, %10, %11 : vector<8x128xf32>
    %cst_7 = arith.constant 0.000000e+00 : f32
    %13 = vector.broadcast %cst_7 : f32 to vector<8x128xf32>
    %14 = arith.select %12, %10, %13 : vector<8x128xi1>, vector<8x128xf32>
    %c0_8 = arith.constant 0 : index
    %c0_9 = arith.constant 0 : index
    %15 = vector.load %arg6[%c0_8, %c0_9] : memref<8x128xf32, #tpu.memory_space<vmem>>, vector<8x128xf32>
    tpu.vector_store %arg6[%c0_8, %c0_9], %14 {strides = array<i32>} : memref<8x128xf32, #tpu.memory_space<vmem>>, vector<8x128xf32>,
    %16 = vector.broadcast %6 : vector<1x128xf32> to vector<8x128xf32>
    %17 = arith.mulf %10, %16 : vector<8x128xf32>
    %cst_10 = arith.constant 0.000000e+00 : f32
    %18 = vector.broadcast %cst_10 : f32 to vector<8x128xf32>
    %19 = arith.select %12, %18, %17 : vector<8x128xi1>, vector<8x128xf32>
    %c0_11 = arith.constant 0 : index
    %c0_12 = arith.constant 0 : index
    %20 = vector.load %arg7[%c0_11, %c0_12] : memref<8x128xf32, #tpu.memory_space<vmem>>, vector<8x128xf32>
    tpu.vector_store %arg7[%c0_11, %c0_12], %19 {strides = array<i32>} : memref<8x128xf32, #tpu.memory_space<vmem>>, vector<8x128xf32>,
    return
  }
  func.func @transform_0(%arg0: i32, %arg1: i32) -> (i32, i32) {
    %c0_i32 = arith.constant 0 : i32
    %c0_i32_0 = arith.constant 0 : i32
    return %arg0, %c0_i32 : i32, i32
  }
  func.func @transform_1(%arg0: i32, %arg1: i32) -> (i32, i32) {
    %c0_i32 = arith.constant 0 : i32
    %c0_i32_0 = arith.constant 0 : i32
    return %c0_i32, %arg1 : i32, i32
  }
  func.func @transform_2(%arg0: i32, %arg1: i32) -> (i32, i32) {
    %c0_i32 = arith.constant 0 : i32
    %c0_i32_0 = arith.constant 0 : i32
    return %c0_i32, %arg1 : i32, i32
  }
  func.func @transform_3(%arg0: i32, %arg1: i32) -> (i32, i32) {
    %c0_i32 = arith.constant 0 : i32
    return %arg0, %arg1 : i32, i32
  }
  func.func @transform_4(%arg0: i32, %arg1: i32) -> (i32, i32) {
    %c0_i32 = arith.constant 0 : i32
    return %arg0, %arg1 : i32, i32
  }
  func.func @transform_5(%arg0: i32, %arg1: i32) -> (i32, i32) {
    %c0_i32 = arith.constant 0 : i32
    return %arg0, %arg1 : i32, i32
  }
}

</mosaic_0001>

<bundles_post_ra>
// kernel: tpu_custom_call.1
= control target key start
LH: loop header
LB: loop body
LE: loop exit
PB: predicated region body
PF: predicated region fallthrough
CT: control target
= control target key end

     0   :  { %11 = vsyncpa [#allocation3], 0  ;;  %s417_s0 = inlined_call_operand.hbm [shape: f32[8,32], index: 0, kind: input, shape index: {}]   ;;  %s418_s1 = inlined_call_operand.hbm [shape: f32[32,128], index: 1, kind: input, shape index: {}]   ;;  %s419_s2 = inlined_call_operand.hbm [shape: f32[3,128], index: 2, kind: input, shape index: {}]   ;;  %s420_s3 = inlined_call_operand.hbm [shape: f32[8,128], index: 3, kind: input, shape index: {}]   ;;  %s421_s4 = inlined_call_operand.hbm [shape: f32[8,128], index: 4, kind: output, shape index: {0}]   ;;  %s422_s5 = inlined_call_operand.hbm [shape: f32[8,128], index: 5, kind: output, shape index: {1}]  }
   0x1   :  { %12 = vsyncpa [#allocation6], 0 }
   0x2   :  { %13 = vsyncpa [#allocation9], 0 }
   0x3   :  { %14 = vsyncpa [#allocation4], 0 }
   0x4   :  { %15 = vsyncpa [#allocation12], 0  ;;  %s359_s18 = smov [#allocation5]  }
   0x5   :  { %s31_s19 = sshll.u32 %s359_s18, 4  ;;  %s32_s19 = int_to_ptr.vmem [resolvable:$true] %s31_s19 }
   0x6   :  { %s237_s20 = scalar_lea.vmem %s32_s19, 512  ;;  %p242_p1 = scmp.lt.s32.totalorder %s32_s19, %s32_s19 }
   0x7   :  { %p238_p0 = scmp.ne.s32.totalorder %s32_s19, %s237_s20  ;;  %p243_p2 = scmp.lt.s32.totalorder %s237_s20, %s237_s20 }
   0x9   :  { %p244_p3 = por %p243_p2, %p242_p1 }
   0xb   :  { %p245_p4 = pnand %p244_p3, %p238_p0 }
   0xd   :  { %248 = shalt.err (!%p245_p4)
}
   0xe   :  { %s360_s21 = smov 128   ;;  %s361_s22 = smov 8  }
   0xf   :  { %37 = dma.hbm_to_vmem [thread:$0]  %s418_s1, 512, %s32_s19, [#allocation6], %s360_s21, %s360_s21, %s361_s22  }
  0x10   :  { %s362_s25 = smov [#allocation2]   ;;  %s363_s27 = smov [#allocation7]  }
  0x11   :  { %s22_s26 = sshll.u32 %s362_s25, 4  ;;  %s44_s28 = sshll.u32 %s363_s27, 4  ;;  %s23_s26 = int_to_ptr.vmem [resolvable:$true] %s22_s26  ;;  %s45_s28 = int_to_ptr.vmem [resolvable:$true] %s44_s28 }
  0x12   :  { %s257_s29 = scalar_lea.vmem %s23_s26, 128  ;;  %p262_p6 = scmp.lt.s32.totalorder %s23_s26, %s23_s26 }
  0x13   :  { %p258_p5 = scmp.ne.s32.totalorder %s23_s26, %s257_s29  ;;  %p263_p7 = scmp.lt.s32.totalorder %s257_s29, %s257_s29 }
  0x15   :  { %p264_p8 = por %p263_p7, %p262_p6 }
  0x17   :  { %p265_p9 = pnand %p264_p8, %p258_p5 }
  0x19   :  { %268 = shalt.err (!%p265_p9)
}
  0x1a   :  { %25 = dma.hbm_to_vmem [thread:$0]  %s417_s0, 128, %s23_s26, [#allocation3]  }
  0x1b   :  { %s277_s7 = scalar_lea.vmem %s45_s28, 64  ;;  %p282_p11 = scmp.lt.s32.totalorder %s45_s28, %s45_s28 }
  0x1c   :  { %p278_p10 = scmp.ne.s32.totalorder %s45_s28, %s277_s7  ;;  %p283_p12 = scmp.lt.s32.totalorder %s277_s7, %s277_s7 }
  0x1e   :  { %p284_p13 = por %p283_p12, %p282_p11 }
  0x20   :  { %p285_p0 = pnand %p284_p13, %p278_p10 }
  0x22   :  { %288 = shalt.err (!%p285_p0)
}
  0x23   :  { %47 = dma.hbm_to_vmem [thread:$0]  %s419_s2, 64, %s45_s28, [#allocation6]  }
  0x24   :  { %s364_s9 = smov [#allocation8]  }
  0x25   :  { %s54_s10 = sshll.u32 %s364_s9, 4  ;;  %s55_s10 = int_to_ptr.vmem [resolvable:$true] %s54_s10 }
  0x26   :  { %s297_s11 = scalar_lea.vmem %s55_s10, 128  ;;  %p302_p2 = scmp.lt.s32.totalorder %s55_s10, %s55_s10 }
  0x27   :  { %p298_p1 = scmp.ne.s32.totalorder %s55_s10, %s297_s11  ;;  %p303_p3 = scmp.lt.s32.totalorder %s297_s11, %s297_s11 }
  0x29   :  { %p304_p4 = por %p303_p3, %p302_p2 }
  0x2b   :  { %p305_p5 = pnand %p304_p4, %p298_p1 }
  0x2d   :  { %308 = shalt.err (!%p305_p5)
}
  0x2e   :  { %57 = dma.hbm_to_vmem [thread:$0]  %s420_s3, 128, %s55_s10, [#allocation9]  }
  0x2f   :  { %349 = dma.done.wait [#allocation3], 128  }
  0x30   :  { %350 = vsyncadd [#allocation3], 4294967168 }
  0x31   :  { %351 = dma.done.wait [#allocation6], 576  }
  0x32   :  { %352 = vsyncadd [#allocation6], 4294966720 }
  0x33   :  { %353 = dma.done.wait [#allocation9], 128  }
  0x34   :  { %354 = vsyncadd [#allocation9], 4294967168  ;;  %v365_v0 = vmov 0.0   ;;  %vm366_vm0 = vmmov 0   ;;  %v74_v1 = vld [vmem:[#allocation5 + $0x18] sm:$0xff]  ;;  %v73_v2 = vld [vmem:[#allocation5 + $0x10] sm:$0xff]  ;;  %v152_v6 = vlaneseq }
  0x35   :  { %208 = vmatprep.subr.mxu0 %v365_v0  ;;  %216 = vmatprep.mubr.msk.f32.mxu0 %vm366_vm0, %v365_v0  ;;  %v72_v3 = vld [vmem:[#allocation5 + $0x8] sm:$0xff]  ;;  %v71_v4 = vld [vmem:[#allocation5] sm:$0xff]  ;;  %v70_v5 = vld [vmem:[#allocation2] sm:$0xff]  ;;  %vm75_vm1 = vcmask 261120   ;;  %s367_s2 = smov [#allocation10]   ;;  %s368_s13 = smov [#allocation11]  }
  0x36   :  { %209 = vmatpush3.msra.mxu0 %v74_v1  ;;  %v153_v7 = vshrl.u32 %v152_v6, 7  ;;  %v149_v9 = vld [vmem:[#allocation7] sm:$0x7]  ;;  %v150_v12 = vld [vmem:[#allocation8] sm:$0xff]  ;;  %s177_s3 = sshll.u32 %s367_s2, 4  ;;  %s187_s14 = sshll.u32 %s368_s13, 4  ;;  %s178_s3 = int_to_ptr.vmem [resolvable:$true] %s177_s3  ;;  %s188_s14 = int_to_ptr.vmem [resolvable:$true] %s187_s14 }
  0x37   :  { %210 = vmatprep.subr.mxu0 %v365_v0  ;;  %s309_s15 = scalar_lea.vmem %s178_s3, 128  ;;  %p314_p7 = scmp.lt.s32.totalorder %s178_s3, %s178_s3 }
  0x38   :  { %211 = vmatpush3.msra.mxu0 %v73_v2  ;;  %v154_v8 = vsub.s32 0, %v153_v7  ;;  %v159_v10 = vsub.s32 1, %v153_v7  ;;  %v166_v11 = vsub.s32 2, %v153_v7  ;;  %p310_p6 = scmp.ne.s32.totalorder %s178_s3, %s309_s15  ;;  %p315_p8 = scmp.lt.s32.totalorder %s309_s15, %s309_s15 }
  0x39   :  { %212 = vmatprep.subr.mxu0 %v365_v0 }
  0x3a   :  { %213 = vmatpush3.msra.mxu0 %v72_v3  ;;  %v155_v13 = vrot.slane %v149_v9, %v154_v8  ;;  %v160_v16 = vrot.slane %v149_v9, %v159_v10  ;;  %v167_v17 = vrot.slane %v149_v9, %v166_v11  ;;  %p316_p9 = por %p315_p8, %p314_p7 }
  0x3b   :  { %214 = vmatprep.subr.mxu0 %v365_v0 }
  0x3c   :  { %215 = vmatpush3.msra.mxu0 %v71_v4  ;;  %p317_p10 = pnand %p316_p9, %p310_p6 }
  0x3d   :  { %217 = vmatmul.mubr.msk.f32.vlgmr.msra.gmra.mxu0 %vm75_vm1, %v70_v5 }
  0xfd   :  { %v145_v14 = vpop.f32.mrf.mxu0 }
  0xfe   :  { %v151_v15 = vadd.f32 %v150_v12, %v145_v14 }
  0xff   :  { %v218_v18 = vpop.f32.mrf.mxu0 }
 0x100   :  { %v156_v19 = vadd.f32 %v155_v13, %v151_v15 }
 0x102   :  { %vm161_vm2 = vcmp.gt.f32.partialorder %v156_v19, %v160_v16  ;;  %v168_v20 = vmul.f32 %v167_v17, %v156_v19 }
 0x103   :  { %v162_v21 = vsel %vm161_vm2, %v156_v19, 0.0 }
 0x104   :  { %163 = vst [vmem:[#allocation10] sm:$0xff] %v162_v21  ;;  %v169_v22 = vsel %vm161_vm2, 0.0, %v168_v20 }
 0x105   :  { %320 = shalt.err (!%p317_p10)
}
 0x106   :  { %180 = dma.vmem_to_hbm [thread:$0]  %s178_s3, 128, %s421_s4, [#allocation4]   ;;  %170 = vst [vmem:[#allocation11] sm:$0xff] %v169_v22 }
 0x107   :  { %s329_s18 = scalar_lea.vmem %s188_s14, 128  ;;  %p334_p12 = scmp.lt.s32.totalorder %s188_s14, %s188_s14 }
 0x108   :  { %p330_p11 = scmp.ne.s32.totalorder %s188_s14, %s329_s18  ;;  %p335_p13 = scmp.lt.s32.totalorder %s329_s18, %s329_s18 }
 0x10a   :  { %p336_p0 = por %p335_p13, %p334_p12 }
 0x10c   :  { %p337_p1 = pnand %p336_p0, %p330_p11 }
 0x10e   :  { %340 = shalt.err (!%p337_p1)
}
 0x10f   :  { %190 = dma.vmem_to_hbm [thread:$0]  %s188_s14, 128, %s422_s5, [#allocation12]  }
 0x110   :  { %355 = dma.done.wait [#allocation4], 128  }
 0x111   :  { %356 = vsyncadd [#allocation4], 4294967168 }
 0x112   :  { %357 = dma.done.wait [#allocation12], 128  }
 0x113   :  { %358 = vsyncadd [#allocation12], 4294967168 }
 0x114   :  { %197 = vsyncpa [#allocation3], 1 }
 0x115   :  { %198 = vsyncpa [#allocation6], 1 }
 0x116   :  { %199 = vsyncpa [#allocation9], 1 }
 0x117   :  { %200 = vsyncpa [#allocation4], 1 }
 0x118   :  { %201 = vsyncpa [#allocation12], 1 }

</bundles_post_ra>
